<compile_context>
chip_gen: v5e
topology: v5e:2x2
jax: 0.10.0
libtpu: 0.0.40
codegen_flags: <defaults>
</compile_context>

<pallas_src>
import jax
import jax.numpy as jnp
from jax.experimental import pallas as pl
from jax.experimental.pallas import tpu as pltpu


_NEG_BIG = -1e30  # bias for padded class columns -> exp underflows to 0.0


def _softmax_rows(logits):
    """Numerically-stable f32 softmax over axis=1 of a (tm, C_pad) tile."""
    m = jnp.max(logits, axis=1, keepdims=True)
    e = jnp.exp(logits - m)
    denom = jnp.sum(e, axis=1, keepdims=True)
    # EUP approximate reciprocal + one Newton step: divide moves off the VALU
    # while keeping essentially full f32 normalization accuracy.
    r = pl.reciprocal(denom, approx=True)
    r = r * (2.0 - denom * r)
    return e * r


def _single_shot_kernel(x_ref, w_ref, b_ref, o_ref):
    # x_ref: (tm, D) compute dtype    w_ref: (D, C_pad) resident weight
    # b_ref: (1, C_pad) f32           o_ref: (tm, C_pad) f32
    logits = jnp.dot(x_ref[...], w_ref[...], preferred_element_type=jnp.float32)
    logits = logits + b_ref[...].astype(jnp.float32)
    o_ref[...] = _softmax_rows(logits).astype(o_ref.dtype)


def _kreduce_kernel(x_ref, w_ref, b_ref, o_ref):
    # x_ref: (tm, tk)   w_ref: (tk, C_pad) pipelined weight tile
    # o_ref: (tm, C_pad) f32, resident across k -> used directly as accumulator
    k = pl.program_id(1)
    nk = pl.num_programs(1)

    @pl.when(k == 0)
    def _init():
        o_ref[...] = jnp.broadcast_to(b_ref[...].astype(jnp.float32), o_ref.shape)

    o_ref[...] += jnp.dot(x_ref[...], w_ref[...],
                          preferred_element_type=jnp.float32)

    @pl.when(k == nk - 1)
    def _finalize():
        o_ref[...] = _softmax_rows(o_ref[...]).astype(o_ref.dtype)


def _round_up(x, m):
    return ((x + m - 1) // m) * m


def _vmem_cap_bytes():
    try:
        cap = getattr(pltpu.get_tpu_info(), "vmem_capacity_bytes", None)
        if cap:
            return int(cap)
    except Exception:
        pass
    return 64 * 2**20  # conservative: v7x physical VMEM per TensorCore


def classify_softmax(x_flat, w, b, *, compute_dtype=jnp.bfloat16, tm=None, tk=None):
    """probs = softmax(x_flat @ w + b, axis=1) as a Pallas TPU kernel.

    x_flat: [B, D], w: [D, C], b: [C].  Returns f32 [B, C].
    """
    B, D = x_flat.shape
    Dw, C = w.shape
    assert Dw == D

    compute_dtype = jnp.dtype(compute_dtype)
    itemsize = compute_dtype.itemsize
    row_tile = 16 if itemsize < 4 else 8  # sub-32-bit packs 2 rows per sublane

    # --- lane-dense class dimension -------------------------------------
    C_pad = max(128, _round_up(C, 128))
    w_pad = jnp.pad(w.astype(compute_dtype), ((0, 0), (0, C_pad - C)))
    b_pad = jnp.pad(b.astype(jnp.float32), (0, C_pad - C),
                    constant_values=_NEG_BIG).reshape(1, C_pad)

    # --- sublane-aligned batch (padded rows are sliced off at the end) ---
    B_pad = max(row_tile, _round_up(B, row_tile))
    x_c = x_flat.astype(compute_dtype)
    if B_pad != B:
        x_c = jnp.pad(x_c, ((0, B_pad - B), (0, 0)))

    # --- batch tile: prefer >=2 tiles so v7x's 2nd TensorCore gets work --
    if tm is None:
        cands = [c for c in (512, 256, 128, 64, 32, 16, 8) if c % row_tile == 0]
        tm = next((c for c in cands if B_pad % c == 0 and B_pad // c >= 2),
                  next((c for c in cands if B_pad % c == 0), B_pad))
    assert B_pad % tm == 0

    vmem_cap = _vmem_cap_bytes()
    budget = int(0.55 * vmem_cap)

    # --- K tiling: single-shot when it comfortably fits VMEM -------------
    if tk is None:
        est_single = (2 * tm * D * itemsize        # x tile, double-buffered
                      + 2 * D * C_pad * itemsize   # resident weight (2 bufs)
                      + 2 * tm * C_pad * 4         # f32 output tiles
                      + 8 * C_pad * 4)             # bias
        if est_single <= budget:
            tk = D
        else:
            tk = next((c for c in (4096, 2048, 1024, 512, 256, 128)
                       if D % c == 0), D)
    single_shot = tk >= D
    if single_shot:
        tk = D
    assert D % tk == 0

    # --- VMEM limit from lane/sublane-padded shapes ----------------------
    est_vmem = (2 * tm * tk * itemsize
                + 2 * tk * C_pad * itemsize
                + 2 * tm * C_pad * 4
                + 8 * C_pad * 4)
    vmem_limit = int(min(vmem_cap - 2 * 2**20, max(32 * 2**20, 2 * est_vmem)))

    cost = pl.CostEstimate(
        flops=2 * B_pad * D * C_pad,
        transcendentals=B_pad * C_pad,
        bytes_accessed=(B_pad * D * itemsize + D * C_pad * itemsize
                        + B_pad * C_pad * 4 + C_pad * 4))

    out_shape = jax.ShapeDtypeStruct((B_pad, C_pad), jnp.float32)

    if single_shot:
        out = pl.pallas_call(
            _single_shot_kernel,
            out_shape=out_shape,
            grid_spec=pltpu.PrefetchScalarGridSpec(
                num_scalar_prefetch=0,
                grid=(B_pad // tm,),
                in_specs=[
                    pl.BlockSpec((tm, D), lambda i: (i, 0)),
                    pl.BlockSpec((D, C_pad), lambda i: (0, 0)),   # fetched once
                    pl.BlockSpec((1, C_pad), lambda i: (0, 0)),
                ],
                out_specs=pl.BlockSpec((tm, C_pad), lambda i: (i, 0)),
            ),
            compiler_params=pltpu.CompilerParams(
                dimension_semantics=("parallel",),
                vmem_limit_bytes=vmem_limit),
            cost_estimate=cost,
        )(x_c, w_pad, b_pad)
    else:
        out = pl.pallas_call(
            _kreduce_kernel,
            out_shape=out_shape,
            grid_spec=pltpu.PrefetchScalarGridSpec(
                num_scalar_prefetch=0,
                grid=(B_pad // tm, D // tk),
                in_specs=[
                    pl.BlockSpec((tm, tk), lambda i, k: (i, k)),
                    pl.BlockSpec((tk, C_pad), lambda i, k: (k, 0)),  # pipelined
                    pl.BlockSpec((1, C_pad), lambda i, k: (0, 0)),
                ],
                # block index independent of k -> resident f32 accumulator/out
                out_specs=pl.BlockSpec((tm, C_pad), lambda i, k: (i, 0)),
            ),
            compiler_params=pltpu.CompilerParams(
                dimension_semantics=("parallel", "arbitrary"),
                vmem_limit_bytes=vmem_limit),
            cost_estimate=cost,
        )(x_c, w_pad, b_pad)

    return out[:B, :C]


def custom_model_forward(x_nchw, w, b, *, compute_dtype=jnp.bfloat16,
                         tm=None, tk=None):
    """Equivalent of CustomModel.forward: softmax(pretrained_model(x), dim=1)."""
    B = x_nchw.shape[0]
    x_flat = x_nchw.reshape(B, -1)  # plain-JAX glue: flatten NCHW
    return classify_softmax(x_flat, w, b,
                            compute_dtype=compute_dtype, tm=tm, tk=tk)


if __name__ == "__main__":
    key = jax.random.PRNGKey(0)
    kx, kw, kb = jax.random.split(key, 3)

    # small shapes: batch=2, channels=4, spatial=16x16, num_classes=10
    B, C, H, W = 2, 4, 16, 16
    num_classes = 10
    D = C * H * W

    x = jax.random.normal(kx, (B, C, H, W), dtype=jnp.float32)
    w = jax.random.normal(kw, (D, num_classes), dtype=jnp.float32) * 0.02
    b = jax.random.normal(kb, (num_classes,), dtype=jnp.float32) * 0.01

    # pure-JAX reference
    x_flat = x.reshape(B, -1)
    ref = jax.nn.softmax(x_flat @ w + b[None, :], axis=1)

    # 1) Default path: bf16 MXU stream, lane-padded classes, single-shot K.
    probs = custom_model_forward(x, w, b)
    probs = jax.block_until_ready(probs)
    assert probs.shape == (B, num_classes)
    assert bool(jnp.allclose(probs, ref, atol=2e-2))
    assert bool(jnp.all(jnp.abs(jnp.sum(probs, axis=1) - 1.0) < 1e-3))

    # 2) f32 compute with forced tk=256: exercises the K-reduction kernel
    #    (accumulate-into-output + pl.when init/finalize) at tight tolerance.
    probs_f32 = custom_model_forward(x, w, b,
                                     compute_dtype=jnp.float32, tk=256)
    probs_f32 = jax.block_until_ready(probs_f32)
    assert bool(jnp.allclose(probs_f32, ref, atol=5e-4, rtol=1e-3))
    assert bool(jnp.all(jnp.abs(jnp.sum(probs_f32, axis=1) - 1.0) < 1e-4))

    print("KERNEL_OK")
</pallas_src>

<mosaic_0001>
module attributes {stable_mosaic.version = 11 : i64} {
  func.func @_single_shot_kernel(%arg0: i32, %arg1: memref<16x1024xbf16, #tpu.memory_space<vmem>>, %arg2: memref<1024x128xbf16, #tpu.memory_space<vmem>>, %arg3: memref<1x128xf32, #tpu.memory_space<vmem>>, %arg4: memref<16x128xf32, #tpu.memory_space<vmem>>) attributes {dimension_semantics = [#tpu.dimension_semantics<parallel>], iteration_bounds = array<i64: 1>, scalar_prefetch = 0 : i64, scratch_operands = 0 : i64, tpu.core_type = #tpu.core_type<tc>, window_params = [{transform_indices = @transform_0, window_bounds = array<i64: 16, 1024>}, {pipeline_mode = #tpu.pipeline_mode<synchronous>, transform_indices = @transform_1, window_bounds = array<i64: 1024, 128>}, {pipeline_mode = #tpu.pipeline_mode<synchronous>, transform_indices = @transform_2, window_bounds = array<i64: 1, 128>}, {transform_indices = @transform_3, window_bounds = array<i64: 16, 128>}]} {
    %c0 = arith.constant 0 : index
    %c0_0 = arith.constant 0 : index
    %0 = vector.load %arg1[%c0, %c0_0] : memref<16x1024xbf16, #tpu.memory_space<vmem>>, vector<16x1024xbf16>
    %c0_1 = arith.constant 0 : index
    %c0_2 = arith.constant 0 : index
    %1 = vector.load %arg2[%c0_1, %c0_2] : memref<1024x128xbf16, #tpu.memory_space<vmem>>, vector<1024x128xbf16>
    %cst = arith.constant dense<0.000000e+00> : vector<16x128xf32>
    %2 = tpu.matmul %0, %1, %cst {dimension_numbers = #tpu.dot_dimension_numbers<[1], [0], [0], [1], [0, 0, 1, 1], [], []>} : vector<16x1024xbf16>, vector<1024x128xbf16>, vector<16x128xf32> -> vector<16x128xf32>
    %c0_3 = arith.constant 0 : index
    %c0_4 = arith.constant 0 : index
    %3 = vector.load %arg3[%c0_3, %c0_4] : memref<1x128xf32, #tpu.memory_space<vmem>>, vector<1x128xf32>
    %4 = vector.broadcast %3 : vector<1x128xf32> to vector<16x128xf32>
    %5 = arith.addf %2, %4 : vector<16x128xf32>
    %cst_5 = arith.constant dense<0xFF800000> : vector<16xf32>
    %6 = vector.multi_reduction <maximumf>, %5, %cst_5 [1] : vector<16x128xf32> to vector<16xf32>
    %7 = vector.shape_cast %6 : vector<16xf32> to vector<16x1xf32>
    %8 = vector.broadcast %7 : vector<16x1xf32> to vector<16x128xf32>
    %9 = arith.subf %5, %8 : vector<16x128xf32>
    %10 = math.exp %9 : vector<16x128xf32>
    %cst_6 = arith.constant dense<0.000000e+00> : vector<16xf32>
    %11 = vector.multi_reduction <add>, %10, %cst_6 [1] : vector<16x128xf32> to vector<16xf32>
    %12 = vector.shape_cast %11 : vector<16xf32> to vector<16x1xf32>
    %13 = tpu.reciprocal %12 {approx = true} : vector<16x1xf32> -> vector<16x1xf32>
    %14 = arith.mulf %12, %13 : vector<16x1xf32>
    %cst_7 = arith.constant 2.000000e+00 : f32
    %15 = vector.broadcast %cst_7 : f32 to vector<16x1xf32>
    %16 = arith.subf %15, %14 : vector<16x1xf32>
    %17 = arith.mulf %13, %16 : vector<16x1xf32>
    %18 = vector.broadcast %17 : vector<16x1xf32> to vector<16x128xf32>
    %19 = arith.mulf %10, %18 : vector<16x128xf32>
    %c0_8 = arith.constant 0 : index
    %c0_9 = arith.constant 0 : index
    %20 = vector.load %arg4[%c0_8, %c0_9] : memref<16x128xf32, #tpu.memory_space<vmem>>, vector<16x128xf32>
    tpu.vector_store %arg4[%c0_8, %c0_9], %19 {strides = array<i32>} : memref<16x128xf32, #tpu.memory_space<vmem>>, vector<16x128xf32>,
    return
  }
  func.func @transform_0(%arg0: i32) -> (i32, i32) {
    %c0_i32 = arith.constant 0 : i32
    %c0_i32_0 = arith.constant 0 : i32
    return %arg0, %c0_i32 : i32, i32
  }
  func.func @transform_1(%arg0: i32) -> (i32, i32) {
    %c0_i32 = arith.constant 0 : i32
    %c0_i32_0 = arith.constant 0 : i32
    %c0_i32_1 = arith.constant 0 : i32
    return %c0_i32, %c0_i32_0 : i32, i32
  }
  func.func @transform_2(%arg0: i32) -> (i32, i32) {
    %c0_i32 = arith.constant 0 : i32
    %c0_i32_0 = arith.constant 0 : i32
    %c0_i32_1 = arith.constant 0 : i32
    return %c0_i32, %c0_i32_0 : i32, i32
  }
  func.func @transform_3(%arg0: i32) -> (i32, i32) {
    %c0_i32 = arith.constant 0 : i32
    %c0_i32_0 = arith.constant 0 : i32
    return %arg0, %c0_i32 : i32, i32
  }
}

</mosaic_0001>

<bundles_post_ra>
// kernel: tpu_custom_call.1
= control target key start
LH: loop header
LB: loop body
LE: loop exit
PB: predicated region body
PF: predicated region fallthrough
CT: control target
= control target key end

     0   :  { %8 = vsyncpa [#allocation3], 0  ;;  %s1266_s0 = inlined_call_operand.hbm [shape: bf16[16,1024], index: 0, kind: input, shape index: {}]   ;;  %s1267_s1 = inlined_call_operand.hbm [shape: bf16[1024,128], index: 1, kind: input, shape index: {}]   ;;  %s1268_s2 = inlined_call_operand.vmem [shape: f32[1,128], index: 2, kind: input, shape index: {}]   ;;  %s1269_s3 = inlined_call_operand.hbm [shape: f32[16,128], index: 3, kind: output, shape index: {}]  }
   0x1   :  { %9 = vsyncpa [#allocation6], 0 }
   0x2   :  { %10 = vsyncpa [#allocation4], 0  ;;  %s15_s14 = sshll.u32 %s1266_s0, 4  ;;  %s1225_s15 = smov [#allocation2]   ;;  %s16_s14 = int_to_ptr.hbm [resolvable:$true] %s15_s14 }
   0x3   :  { %s17_s16 = sshll.u32 %s1225_s15, 4  ;;  %s28_s19 = sshll.u32 %s1267_s1, 4  ;;  %s18_s16 = int_to_ptr.vmem [resolvable:$true] %s17_s16  ;;  %s29_s19 = int_to_ptr.hbm [resolvable:$true] %s28_s19 }
   0x4   :  { %s1226_s20 = smov 512   ;;  %s1227_s21 = smov 32  }
   0x5   :  { %23 = dma.hbm_to_vmem [thread:$0]  %s16_s14, 1024, %s18_s16, [#allocation3], %s1226_s20, %s1226_s20, %s1227_s21  }
   0x6   :  { %s1228_s22 = smov [#allocation5]   ;;  %s1229_s24 = smov 64  }
   0x7   :  { %s30_s23 = sshll.u32 %s1228_s22, 4  ;;  %s1230_s25 = smov 4   ;;  %s31_s23 = int_to_ptr.vmem [resolvable:$true] %s30_s23 }
   0x8   :  { %36 = dma.hbm_to_vmem [thread:$0]  %s29_s19, 8192, %s31_s23, [#allocation6], %s1229_s24, %s1229_s24, %s1230_s25  }
   0x9   :  { %1219 = dma.done.wait [#allocation3], 1024  }
   0xa   :  { %1220 = vsyncadd [#allocation3], 4294966272 }
   0xb   :  { %1221 = dma.done.wait [#allocation6], 8192  }
   0xc   :  { %1222 = vsyncadd [#allocation6], 4294959104  ;;  %v1072_v0 = vld [vmem:[#allocation5 + $0x38] sm:$0xff]  ;;  %v1071_v4 = vld [vmem:[#allocation5 + $0x30] sm:$0xff]  ;;  %s755_s29 = sshll.u32 %s1269_s3, 4  ;;  %s1232_s30 = smov 128   ;;  %s756_s29 = int_to_ptr.hbm [resolvable:$true] %s755_s29 }
   0xd   :  { %v1080_v1 = vld [vmem:[#allocation5 + $0x78] sm:$0xff]  ;;  %611 = vmatpush.bf16.msra.mxu0 %v1072_v0  ;;  %v1079_v5 = vld [vmem:[#allocation5 + $0x70] sm:$0xff]  ;;  %v1070_v8 = vld [vmem:[#allocation5 + $0x28] sm:$0xff]  ;;  %s1233_s4 = smov 8  }
   0xe   :  { %v1088_v2 = vld [vmem:[#allocation5 + $0xb8] sm:$0xff]  ;;  %625 = vmatpush.bf16.msra.mxu1 %v1080_v1  ;;  %v1087_v6 = vld [vmem:[#allocation5 + $0xb0] sm:$0xff]  ;;  %v1078_v9 = vld [vmem:[#allocation5 + $0x68] sm:$0xff] }
   0xf   :  { %v1096_v3 = vld [vmem:[#allocation5 + $0xf8] sm:$0xff]  ;;  %639 = vmatpush.bf16.msra.mxu2 %v1088_v2  ;;  %v1095_v7 = vld [vmem:[#allocation5 + $0xf0] sm:$0xff]  ;;  %v1086_v10 = vld [vmem:[#allocation5 + $0xa8] sm:$0xff] }
  0x10   :  { %653 = vmatpush.bf16.msra.mxu3 %v1096_v3  ;;  %v1094_v11 = vld [vmem:[#allocation5 + $0xe8] sm:$0xff]  ;;  %v1069_v12 = vld [vmem:[#allocation5 + $0x20] sm:$0xff]  ;;  %v1068_v16 = vld [vmem:[#allocation5 + $0x18] sm:$0xff] }
  0x11   :  { %612 = vmatpush.bf16.msra.mxu0 %v1071_v4  ;;  %v1077_v13 = vld [vmem:[#allocation5 + $0x60] sm:$0xff]  ;;  %v1076_v17 = vld [vmem:[#allocation5 + $0x58] sm:$0xff]  ;;  %v1067_v20 = vld [vmem:[#allocation5 + $0x10] sm:$0xff] }
  0x12   :  { %626 = vmatpush.bf16.msra.mxu1 %v1079_v5  ;;  %v1085_v14 = vld [vmem:[#allocation5 + $0xa0] sm:$0xff]  ;;  %v1084_v18 = vld [vmem:[#allocation5 + $0x98] sm:$0xff]  ;;  %v1075_v21 = vld [vmem:[#allocation5 + $0x50] sm:$0xff] }
  0x13   :  { %640 = vmatpush.bf16.msra.mxu2 %v1087_v6  ;;  %v1093_v15 = vld [vmem:[#allocation5 + $0xe0] sm:$0xff]  ;;  %v1092_v19 = vld [vmem:[#allocation5 + $0xd8] sm:$0xff]  ;;  %v1083_v22 = vld [vmem:[#allocation5 + $0x90] sm:$0xff] }
  0x14   :  { %654 = vmatpush.bf16.msra.mxu3 %v1095_v7  ;;  %v1091_v23 = vld [vmem:[#allocation5 + $0xd0] sm:$0xff]  ;;  %v1066_v24 = vld [vmem:[#allocation5 + $0x8] sm:$0xff]  ;;  %v1065_v28 = vld [vmem:[#allocation5] sm:$0xff] }
  0x15   :  { %613 = vmatpush.bf16.msra.mxu0 %v1070_v8  ;;  %v1074_v25 = vld [vmem:[#allocation5 + $0x48] sm:$0xff]  ;;  %v1073_v29 = vld [vmem:[#allocation5 + $0x40] sm:$0xff]  ;;  %v1104_v32 = vld [vmem:[#allocation5 + $0x138] sm:$0xff] }
  0x16   :  { %627 = vmatpush.bf16.msra.mxu1 %v1078_v9  ;;  %v1082_v26 = vld [vmem:[#allocation5 + $0x88] sm:$0xff]  ;;  %v1081_v30 = vld [vmem:[#allocation5 + $0x80] sm:$0xff]  ;;  %v1112_v33 = vld [vmem:[#allocation5 + $0x178] sm:$0xff] }
  0x17   :  { %641 = vmatpush.bf16.msra.mxu2 %v1086_v10  ;;  %v1090_v27 = vld [vmem:[#allocation5 + $0xc8] sm:$0xff]  ;;  %v1089_v31 = vld [vmem:[#allocation5 + $0xc0] sm:$0xff]  ;;  %v1120_v42 = vld [vmem:[#allocation5 + $0x1b8] sm:$0xff] }
  0x18   :  { %655 = vmatpush.bf16.msra.mxu3 %v1094_v11  ;;  %v779_v34 = vld [vmem:[#allocation2 + $0x8] sm:$0xf]  ;;  %v771_v36 = vld [vmem:[#allocation2] sm:$0xf]  ;;  %v1058_v38 = vld [vmem:[#allocation2 + $0xc] sm:$0xf] }
  0x19   :  { %614 = vmatpush.bf16.msra.mxu0 %v1069_v12  ;;  %v1062_v35 = vld [vmem:[#allocation2 + $0x24] sm:$0xf0]  ;;  %v1061_v37 = vld [vmem:[#allocation2 + $0x1c] sm:$0xf0]  ;;  %v781_v39 = vld [vmem:[#allocation2 + $0x28] sm:$0xf0] }
  0x1a   :  { %628 = vmatpush.bf16.msra.mxu1 %v1077_v13  ;;  %v1057_v40 = vld [vmem:[#allocation2 + $0x4] sm:$0xf]  ;;  %v1128_v43 = vld [vmem:[#allocation5 + $0x1f8] sm:$0xff]  ;;  %v780_v44 = vor.u32 %v1062_v35, %v779_v34  ;;  %v772_v45 = vor.u32 %v1061_v37, %v771_v36  ;;  %v784_v46 = vor.u32 %v1058_v38, %v781_v39  ;;  %v1103_v48 = vld [vmem:[#allocation5 + $0x130] sm:$0xff] }
  0x1b   :  { %642 = vmatpush.bf16.msra.mxu2 %v1085_v14  ;;  %v773_v41 = vld [vmem:[#allocation2 + $0x20] sm:$0xf0]  ;;  %v1111_v49 = vld [vmem:[#allocation5 + $0x170] sm:$0xff]  ;;  %v1102_v52 = vld [vmem:[#allocation5 + $0x128] sm:$0xff] }
  0x1c   :  { %656 = vmatpush.bf16.msra.mxu3 %v1093_v15  ;;  %v776_v47 = vor.u32 %v1057_v40, %v773_v41  ;;  %v1119_v50 = vld [vmem:[#allocation5 + $0x1b0] sm:$0xff]  ;;  %v1110_v53 = vld [vmem:[#allocation5 + $0x168] sm:$0xff]  ;;  %v1101_v56 = vld [vmem:[#allocation5 + $0x120] sm:$0xff] }
  0x1d   :  { %615 = vmatpush.bf16.msra.mxu0 %v1068_v16  ;;  %v1127_v51 = vld [vmem:[#allocation5 + $0x1f0] sm:$0xff]  ;;  %v1118_v54 = vld [vmem:[#allocation5 + $0x1a8] sm:$0xff]  ;;  %v1109_v57 = vld [vmem:[#allocation5 + $0x160] sm:$0xff] }
  0x1e   :  { %629 = vmatpush.bf16.msra.mxu1 %v1076_v17  ;;  %v1126_v55 = vld [vmem:[#allocation5 + $0x1e8] sm:$0xff]  ;;  %v1117_v58 = vld [vmem:[#allocation5 + $0x1a0] sm:$0xff]  ;;  %v1100_v60 = vld [vmem:[#allocation5 + $0x118] sm:$0xff] }
  0x1f   :  { %643 = vmatpush.bf16.msra.mxu2 %v1084_v18  ;;  %v1125_v59 = vld [vmem:[#allocation5 + $0x1e0] sm:$0xff]  ;;  %v1108_v61 = vld [vmem:[#allocation5 + $0x158] sm:$0xff]  ;;  %v1099_v0 = vld [vmem:[#allocation5 + $0x110] sm:$0xff] }
  0x20   :  { %657 = vmatpush.bf16.msra.mxu3 %v1092_v19  ;;  %v1116_v62 = vld [vmem:[#allocation5 + $0x198] sm:$0xff]  ;;  %v1107_v1 = vld [vmem:[#allocation5 + $0x150] sm:$0xff]  ;;  %v1098_v4 = vld [vmem:[#allocation5 + $0x108] sm:$0xff] }
  0x21   :  { %616 = vmatpush.bf16.msra.mxu0 %v1067_v20  ;;  %v1124_v63 = vld [vmem:[#allocation5 + $0x1d8] sm:$0xff]  ;;  %v1115_v2 = vld [vmem:[#allocation5 + $0x190] sm:$0xff]  ;;  %v1106_v5 = vld [vmem:[#allocation5 + $0x148] sm:$0xff] }
  0x22   :  { %630 = vmatpush.bf16.msra.mxu1 %v1075_v21  ;;  %v1123_v3 = vld [vmem:[#allocation5 + $0x1d0] sm:$0xff]  ;;  %v1114_v6 = vld [vmem:[#allocation5 + $0x188] sm:$0xff]  ;;  %v1097_v8 = vld [vmem:[#allocation5 + $0x100] sm:$0xff] }
  0x23   :  { %644 = vmatpush.bf16.msra.mxu2 %v1083_v22  ;;  %v1122_v7 = vld [vmem:[#allocation5 + $0x1c8] sm:$0xff]  ;;  %v1105_v9 = vld [vmem:[#allocation5 + $0x140] sm:$0xff]  ;;  %v787_v12 = vld [vmem:[#allocation2 + $0x10] sm:$0xf] }
  0x24   :  { %658 = vmatpush.bf16.msra.mxu3 %v1091_v23  ;;  %v1113_v10 = vld [vmem:[#allocation5 + $0x180] sm:$0xff]  ;;  %v1063_v13 = vld [vmem:[#allocation2 + $0x2c] sm:$0xf0]  ;;  %v1059_v14 = vld [vmem:[#allocation2 + $0x14] sm:$0xf] }
  0x25   :  { %617 = vmatpush.bf16.msra.mxu0 %v1066_v24  ;;  %v1121_v11 = vld [vmem:[#allocation5 + $0x1c0] sm:$0xff]  ;;  %v789_v15 = vld [vmem:[#allocation2 + $0x30] sm:$0xf0]  ;;  %v795_v16 = vld [vmem:[#allocation2 + $0x18] sm:$0xf]  ;;  %v788_v20 = vor.u32 %v1063_v13, %v787_v12 }
  0x26   :  { %631 = vmatpush.bf16.msra.mxu1 %v1074_v25  ;;  %v1064_v17 = vld [vmem:[#allocation2 + $0x34] sm:$0xf0]  ;;  %v1060_v18 = vld [vmem:[#allocation2 + $0x1c] sm:$0xf]  ;;  %v792_v21 = vor.u32 %v1059_v14, %v789_v15  ;;  %v1138_v25 = vld [vmem:[%s1268_s2] ss:$0 sm:$0xff] }
  0x27   :  { %645 = vmatpush.bf16.msra.mxu2 %v1082_v26  ;;  %v797_v19 = vld [vmem:[#allocation2 + $0x38] sm:$0xf0]  ;;  %v796_v22 = vor.u32 %v1064_v17, %v795_v16  ;;  %s1231_s2 = smov [#allocation7]  }
  0x28   :  { %659 = vmatpush.bf16.msra.mxu3 %v1090_v27  ;;  %v800_v23 = vor.u32 %v1060_v18, %v797_v19  ;;  %s753_s26 = sshll.u32 %s1231_s2, 4  ;;  %s754_s26 = int_to_ptr.vmem [resolvable:$true] %s753_s26 }
  0x29   :  { %618 = vmatpush.bf16.msra.mxu0 %v1065_v28 }
  0x2a   :  { %632 = vmatpush.bf16.msra.mxu1 %v1073_v29 }
  0x2b   :  { %646 = vmatpush.bf16.msra.mxu2 %v1081_v30 }
  0x2c   :  { %660 = vmatpush.bf16.msra.mxu3 %v1089_v31  ;;  %619 = vmatmul.bf16.vlgmr.msra.gmra.mxu0 %v772_v45 }
  0x2d   :  { %667 = vmatpush.bf16.msrb.mxu0 %v1104_v32  ;;  %633 = vmatmul.bf16.vlgmr.msra.gmra.mxu1 %v776_v47 }
  0x2e   :  { %681 = vmatpush.bf16.msrb.mxu1 %v1112_v33  ;;  %647 = vmatmul.bf16.vlgmr.msra.gmra.mxu2 %v780_v44 }
  0x2f   :  { %695 = vmatpush.bf16.msrb.mxu2 %v1120_v42  ;;  %661 = vmatmul.bf16.vlgmr.msra.gmra.mxu3 %v784_v46 }
  0x30   :  { %709 = vmatpush.bf16.msrb.mxu3 %v1128_v43 }
  0x31   :  { %668 = vmatpush.bf16.msrb.mxu0 %v1103_v48 }
  0x32   :  { %682 = vmatpush.bf16.msrb.mxu1 %v1111_v49 }
  0x33   :  { %696 = vmatpush.bf16.msrb.mxu2 %v1119_v50 }
  0x34   :  { %710 = vmatpush.bf16.msrb.mxu3 %v1127_v51 }
  0x35   :  { %669 = vmatpush.bf16.msrb.mxu0 %v1102_v52 }
  0x36   :  { %683 = vmatpush.bf16.msrb.mxu1 %v1110_v53 }
  0x37   :  { %697 = vmatpush.bf16.msrb.mxu2 %v1118_v54 }
  0x38   :  { %711 = vmatpush.bf16.msrb.mxu3 %v1126_v55 }
  0x39   :  { %670 = vmatpush.bf16.msrb.mxu0 %v1101_v56 }
  0x3a   :  { %684 = vmatpush.bf16.msrb.mxu1 %v1109_v57 }
  0x3b   :  { %698 = vmatpush.bf16.msrb.mxu2 %v1117_v58 }
  0x3c   :  { %712 = vmatpush.bf16.msrb.mxu3 %v1125_v59 }
  0x3d   :  { %671 = vmatpush.bf16.msrb.mxu0 %v1100_v60 }
  0x3e   :  { %685 = vmatpush.bf16.msrb.mxu1 %v1108_v61 }
  0x3f   :  { %699 = vmatpush.bf16.msrb.mxu2 %v1116_v62 }
  0x40   :  { %713 = vmatpush.bf16.msrb.mxu3 %v1124_v63 }
  0x41   :  { %672 = vmatpush.bf16.msrb.mxu0 %v1099_v0 }
  0x42   :  { %686 = vmatpush.bf16.msrb.mxu1 %v1107_v1 }
  0x43   :  { %700 = vmatpush.bf16.msrb.mxu2 %v1115_v2 }
  0x44   :  { %714 = vmatpush.bf16.msrb.mxu3 %v1123_v3 }
  0x45   :  { %673 = vmatpush.bf16.msrb.mxu0 %v1098_v4 }
  0x46   :  { %687 = vmatpush.bf16.msrb.mxu1 %v1106_v5 }
  0x47   :  { %701 = vmatpush.bf16.msrb.mxu2 %v1114_v6 }
  0x48   :  { %715 = vmatpush.bf16.msrb.mxu3 %v1122_v7 }
  0x49   :  { %674 = vmatpush.bf16.msrb.mxu0 %v1097_v8 }
  0x4a   :  { %688 = vmatpush.bf16.msrb.mxu1 %v1105_v9 }
  0x4b   :  { %702 = vmatpush.bf16.msrb.mxu2 %v1113_v10 }
  0x4c   :  { %716 = vmatpush.bf16.msrb.mxu3 %v1121_v11  ;;  %675 = vmatmul.bf16.vlgmr.msrb.gmra.mxu0 %v788_v20 }
  0x4d   :  { %689 = vmatmul.bf16.vlgmr.msrb.gmra.mxu1 %v792_v21 }
  0x4e   :  { %703 = vmatmul.bf16.vlgmr.msrb.gmra.mxu2 %v796_v22 }
  0x4f   :  { %717 = vmatmul.bf16.vlgmr.msrb.gmra.mxu3 %v800_v23 }
  0xa9   :  { %v620_v24 = vpop.f32.mrf.mxu0 }
  0xaa   :  { %v634_v26 = vpop.f32.mrf.mxu1  ;;  %v621_v27 = vadd.f32 %v1138_v25, %v620_v24 }
  0xac   :  { %v635_v30 = vadd.f32 %v634_v26, %v621_v27 }
  0xb1   :  { %v648_v28 = vpop.f32.mrf.mxu2  ;;  %v622_v31 = vpop.f32.mrf.mxu0 }
  0xb2   :  { %v662_v29 = vpop.f32.mrf.mxu3  ;;  %v636_v32 = vpop.f32.mrf.mxu1  ;;  %v649_v33 = vadd.f32 %v648_v28, %v635_v30  ;;  %v623_v34 = vadd.f32 %v1138_v25, %v622_v31 }
  0xb4   :  { %v663_v37 = vadd.f32 %v662_v29, %v649_v33  ;;  %v637_v38 = vadd.f32 %v636_v32, %v623_v34 }
  0xb9   :  { %v650_v35 = vpop.f32.mrf.mxu2 }
  0xba   :  { %v664_v36 = vpop.f32.mrf.mxu3  ;;  %v651_v42 = vadd.f32 %v650_v35, %v637_v38 }
  0xbc   :  { %v665_v46 = vadd.f32 %v664_v36, %v651_v42 }
  0xc9   :  { %v676_v39 = vpop.f32.mrf.mxu0 }
  0xca   :  { %v677_v40 = vadd.f32 %v676_v39, %v663_v37  ;;  %v690_v41 = vpop.f32.mrf.mxu1 }
  0xcc   :  { %v691_v43 = vadd.f32 %v690_v41, %v677_v40 }
  0xd1   :  { %v704_v44 = vpop.f32.mrf.mxu2  ;;  %v678_v48 = vpop.f32.mrf.mxu0 }
  0xd2   :  { %v718_v45 = vpop.f32.mrf.mxu3  ;;  %v705_v47 = vadd.f32 %v704_v44, %v691_v43  ;;  %v679_v50 = vadd.f32 %v678_v48, %v665_v46  ;;  %v692_v51 = vpop.f32.mrf.mxu1 }
  0xd4   :  { %v719_v49 = vadd.f32 %v718_v45, %v705_v47  ;;  %v693_v52 = vadd.f32 %v692_v51, %v679_v50 }
  0xd6   :  { %723 = vmax.xlane.f32.xlu0 %v719_v49 }
  0xd9   :  { %v706_v53 = vpop.f32.mrf.mxu2 }
  0xda   :  { %v707_v54 = vadd.f32 %v706_v53, %v693_v52  ;;  %v720_v55 = vpop.f32.mrf.mxu3 }
  0xdc   :  { %v721_v56 = vadd.f32 %v720_v55, %v707_v54 }
  0xde   :  { %725 = vmax.xlane.f32.xlu0 %v721_v56 }
 0x149   :  { %v724_v57 = vpop.xlane.xlu0 %723 }
 0x14a   :  { %v727_v58 = vsub.f32 %v719_v49, %v724_v57 }
 0x14c   :  { %v729_v59 = vmul.f32 1.442695, %v727_v58 }
 0x14e   :  { %1139 = vpow2.f32 %v729_v59 }
 0x151   :  { %v726_v60 = vpop.xlane.xlu0 %725 }
 0x152   :  { %v728_v61 = vsub.f32 %v721_v56, %v726_v60 }
 0x154   :  { %v1140_v62 = vpop.eup %1139  ;;  %v731_v63 = vmul.f32 1.442695, %v728_v61 }
 0x155   :  { %733 = vadd.xlane.f32.xlu1 %v1140_v62 }
 0x156   :  { %1141 = vpow2.f32 %v731_v63 }
 0x15c   :  { %v1142_v0 = vpop.eup %1141 }
 0x15d   :  { %735 = vadd.xlane.f32.xlu1 %v1142_v0 }
 0x1c8   :  { %v734_v1 = vpop.xlane.xlu1 %733 }
 0x1c9   :  { %1143 = vrcp.f32 %v734_v1 }
 0x1cf   :  { %v1144_v2 = vpop.eup %1143 }
 0x1d0   :  { %v739_v3 = vmul.f32 %v1144_v2, %v734_v1  ;;  %v736_v4 = vpop.xlane.xlu1 %735 }
 0x1d1   :  { %1145 = vrcp.f32 %v736_v4 }
 0x1d2   :  { %v741_v5 = vsub.f32 2.0, %v739_v3 }
 0x1d4   :  { %v743_v6 = vmul.f32 %v1144_v2, %v741_v5 }
 0x1d6   :  { %v745_v7 = vmul.f32 %v1140_v62, %v743_v6 }
 0x1d7   :  { %v1146_v8 = vpop.eup %1145 }
 0x1d8   :  { %747 = vst [vmem:[#allocation7] sm:$0xff] %v745_v7  ;;  %v740_v9 = vmul.f32 %v1146_v8, %v736_v4 }
 0x1da   :  { %v742_v10 = vsub.f32 2.0, %v740_v9 }
 0x1dc   :  { %v744_v11 = vmul.f32 %v1146_v8, %v742_v10 }
 0x1de   :  { %v746_v12 = vmul.f32 %v1142_v0, %v744_v11 }
 0x1e0   :  { %748 = vst [vmem:[#allocation7 + $0x8] sm:$0xff] %v746_v12 }
 0x1e1   :  { %761 = dma.vmem_to_hbm [thread:$0]  %s754_s26, 256, %s756_s29, [#allocation4], %s1232_s30, %s1232_s30, %s1233_s4  }
 0x1e2   :  { %1223 = dma.done.wait [#allocation4], 256  }
 0x1e3   :  { %1224 = vsyncadd [#allocation4], 4294967040 }
 0x1e4   :  { %766 = vsyncpa [#allocation3], 1 }
 0x1e5   :  { %767 = vsyncpa [#allocation6], 1 }
 0x1e6   :  { %768 = vsyncpa [#allocation4], 1 }

</bundles_post_ra>
